<compile_context>
chip_gen: v5e
topology: v5e:2x2
jax: 0.10.0
libtpu: 0.0.40
codegen_flags: <defaults>
</compile_context>

<pallas_src>
import functools

import jax
import jax.numpy as jnp
from jax import lax
from jax.experimental import pallas as pl
from jax.experimental.pallas import tpu as pltpu


# --------------------------------------------------------------------------- shared in-kernel math

def _ce_math(logits, labels, num_classes, eos_coef):
    """F.cross_entropy(logits, labels, weight=empty_weight), lane-dense layout.

    logits: [C+1, R] f32 (class axis on sublanes), labels: [1, R] int32.  Returns (1,1)."""
    c1, r = logits.shape
    rows = lax.broadcasted_iota(jnp.int32, (c1, r), 0)
    picked = jnp.sum(jnp.where(rows == labels, logits, 0.0), axis=0, keepdims=True)   # [1,R]
    m = jnp.max(logits, axis=0, keepdims=True)
    lse = jnp.log(jnp.sum(jnp.exp(logits - m), axis=0, keepdims=True)) + m            # [1,R]
    nll = lse - picked
    w = jnp.where(labels == num_classes,
                  jnp.float32(eos_coef), jnp.float32(1.0))                            # empty_weight[y]
    num = jnp.sum(w * nll, axis=(0, 1), keepdims=True)
    den = jnp.sum(w, axis=(0, 1), keepdims=True)
    return num / den                                                                   # (1,1)


def _clip_math(img, txt, temperature):
    """Whole-batch CLIP loss; img/txt are bf16 [B, N, D], accumulation in f32."""
    inv_t = 1.0 / temperature
    # logits[b] = txt[b] @ img[b].T / temperature
    logits = jnp.einsum('bnd,bmd->bnm', txt, img, preferred_element_type=jnp.float32) * inv_t
    img_sim = jnp.einsum('bnd,bmd->bnm', img, img, preferred_element_type=jnp.float32)
    txt_sim = jnp.einsum('bnd,bmd->bnm', txt, txt, preferred_element_type=jnp.float32)

    s = (img_sim + txt_sim) * (0.5 * temperature)                  # [B,N,N]
    e = jnp.exp(s - jnp.max(s, axis=-1, keepdims=True))
    tgt = e / jnp.sum(e, axis=-1, keepdims=True)                   # exact softmax targets (tiny)

    # texts_loss  = cross_entropy(logits,   tgt)   -> row-wise log-sum-exp
    mr = jnp.max(logits, axis=-1, keepdims=True)
    lse_r = jnp.log(jnp.sum(jnp.exp(logits - mr), axis=-1, keepdims=True)) + mr
    texts_loss = jnp.sum(-tgt * (logits - lse_r), axis=-1)         # [B, N]
    # images_loss = cross_entropy(logits.T, tgt.T) -> column log-sum-exp, no transpose needed
    mc = jnp.max(logits, axis=-2, keepdims=True)
    lse_c = jnp.log(jnp.sum(jnp.exp(logits - mc), axis=-2, keepdims=True)) + mc
    images_loss = jnp.sum(-tgt * (logits - lse_c), axis=-2)        # [B, N]

    # mean over N per image, then mean over B  ==  overall mean (equal N per image).
    return jnp.mean((texts_loss + images_loss) * 0.5, axis=(0, 1), keepdims=True)


def _cosine_math(tok):
    """loss_cosine: F.normalize(p=2, dim=2), bmm, zero diagonal, mean.  tok: bf16 [B,T,D]."""
    x = tok.astype(jnp.float32)
    b, t, _ = x.shape
    ss = jnp.sum(x * x, axis=-1, keepdims=True)
    xn = (x * lax.rsqrt(jnp.maximum(ss, 1e-24))).astype(jnp.bfloat16)   # == x / max(||x||, 1e-12)
    sim = jnp.einsum('btd,bsd->bts', xn, xn, preferred_element_type=jnp.float32)
    rows = lax.broadcasted_iota(jnp.int32, (b, t, t), 1)
    cols = lax.broadcasted_iota(jnp.int32, (b, t, t), 2)
    sim = jnp.where(rows == cols, 0.0, sim)                        # masked_fill_(eye, 0)
    return jnp.sum(jnp.sum(sim, axis=0), axis=(0, 1), keepdims=True) * (1.0 / (b * t * t))


def _l2_math(tok, bs):
    """loss_l2: for token index b' < bs, -sum_batch |tok[:, b', 0] - tok[:, b', 1]|; mean over b'."""
    x = tok.astype(jnp.float32)
    diff = jnp.abs(x[:, :, 0:1] - x[:, :, 1:2])                    # [B, T, 1]
    per_tok = -jnp.sum(diff, axis=0)                               # [T, 1]
    return jnp.sum(per_tok[:bs, :], axis=(0, 1), keepdims=True) * (1.0 / bs)


# --------------------------------------------------------------------------- kernels

def _fused_scalar_kernel(num_classes, eos_coef, temperature, bs,
                         logits_ref, labels_ref, img_ref, txt_ref, tok_ref,
                         ce_ref, clip_ref, cos_ref, l2_ref):
    """One launch for all microsecond-scale scalar losses (CE + CLIP + cosine + l2)."""
    ce_ref[...] = _ce_math(logits_ref[...], labels_ref[...], num_classes, eos_coef)
    clip_ref[...] = _clip_math(img_ref[...], txt_ref[...], temperature)
    tok = tok_ref[...]                                             # read binary_token once
    cos_ref[...] = _cosine_math(tok)
    l2_ref[...] = _l2_math(tok, bs)


def _weighted_ce_kernel(num_classes, eos_coef, logits_ref, labels_ref, out_ref):
    out_ref[...] = _ce_math(logits_ref[...], labels_ref[...], num_classes, eos_coef)


def _clip_kernel(temperature, img_ref, txt_ref, out_ref):
    out_ref[...] = _clip_math(img_ref[...], txt_ref[...], temperature)


def _cosine_l2_kernel(bs, tok_ref, cos_ref, l2_ref):
    tok = tok_ref[...]
    cos_ref[...] = _cosine_math(tok)
    l2_ref[...] = _l2_math(tok, bs)


def _mask_loss_kernel(p_total, logits_ref, labels_ref, ce_ref, dice_ref,
                      bce_acc, numer_acc, denom_acc):
    """sigmoid_ce_loss (sum of per-mask means) + dice_loss (sum), tiled over the point axis.

    Inputs stream as bf16; the ragged last tile is masked in-kernel (no wrapper-side pad)."""
    j = pl.program_id(0)

    @pl.when(j == 0)
    def _init():
        bce_acc[...] = jnp.zeros_like(bce_acc)
        numer_acc[...] = jnp.zeros_like(numer_acc)
        denom_acc[...] = jnp.zeros_like(denom_acc)

    x = logits_ref[...].astype(jnp.float32)                        # [M, TP] bf16 -> f32
    t = labels_ref[...].astype(jnp.float32)
    m, tp = x.shape
    lane = j * tp + lax.broadcasted_iota(jnp.int32, (m, tp), 1)
    valid = lane < p_total                                         # mask the ragged last tile

    e = jnp.exp(-jnp.abs(x))                                       # one exp feeds BCE + sigmoid
    # binary_cross_entropy_with_logits, reduction='none'
    bce = jnp.maximum(x, 0.0) - x * t + jnp.log(1.0 + e)
    inv = pl.reciprocal(1.0 + e, approx=True)                      # EUP slot (hot path)
    p = jnp.where(x >= 0.0, inv, e * inv)                          # sigmoid(x)

    bce_acc[...] += jnp.sum(jnp.where(valid, bce, 0.0), axis=(0, 1), keepdims=True)   # (1,1)
    numer_acc[...] += jnp.sum(jnp.where(valid, p * t, 0.0), axis=1, keepdims=True)    # [M,1]
    denom_acc[...] += jnp.sum(jnp.where(valid, p + t, 0.0), axis=1, keepdims=True)    # [M,1]

    @pl.when(j == pl.num_programs(0) - 1)
    def _finalize():
        # sum_m mean_p(bce) == total_sum / P  (normalized by the FULL point count).
        ce_ref[...] = bce_acc[...] * (1.0 / p_total)
        dice = 1.0 - (2.0 * numer_acc[...] + 1.0) / (denom_acc[...] + 1.0)   # exact, runs once
        dice_ref[...] = jnp.sum(dice, axis=(0, 1), keepdims=True)


# --------------------------------------------------------------------------- wrappers

_VMEM_LIMIT = 32 * 1024 * 1024     # raises v5e's 16 MiB default; within v7x's 64 MiB physical


def _choose_point_tile(m, p):
    """Largest point tile (multiple of 128, or the full extent) fitting a ~24 MiB VMEM budget.

    Budget = 2 streams (logits + labels, bf16) x 2 pipeline buffers x M rows x TP points."""
    budget = 24 * 1024 * 1024
    rows = max(m, 16)                          # bf16 sublane packing pads small M
    per_point_bytes = 2 * 2 * 2 * rows
    max_tp = max(128, (budget // per_point_bytes) // 128 * 128)
    if p <= max_tp:
        return int(p)                          # single full-extent block, no masking needed
    return int(max_tp)


def fused_scalar_losses(logits_t, labels_row, image_features, text_features, binary_token,
                        num_classes, eos_coef, temperature, bs):
    """CE + CLIP + cosine + l2 in a single pallas_call (4 scalar outputs)."""
    ce, clip, cos, l2 = pl.pallas_call(
        functools.partial(_fused_scalar_kernel, num_classes, float(eos_coef),
                          float(temperature), int(bs)),
        out_shape=tuple(jax.ShapeDtypeStruct((1, 1), jnp.float32) for _ in range(4)),
        compiler_params=pltpu.CompilerParams(vmem_limit_bytes=_VMEM_LIMIT),
    )(logits_t.astype(jnp.float32), labels_row.astype(jnp.int32),
      image_features.astype(jnp.bfloat16), text_features.astype(jnp.bfloat16),
      binary_token.astype(jnp.bfloat16))
    return ce[0, 0], clip[0, 0], cos[0, 0], l2[0, 0]


def weighted_cross_entropy(logits_flat, labels_flat, num_classes, eos_coef):
    r, _ = logits_flat.shape
    out = pl.pallas_call(
        functools.partial(_weighted_ce_kernel, num_classes, float(eos_coef)),
        out_shape=jax.ShapeDtypeStruct((1, 1), jnp.float32),
        compiler_params=pltpu.CompilerParams(vmem_limit_bytes=_VMEM_LIMIT),
    )(logits_flat.astype(jnp.float32).T,                            # lane-dense [C+1, R]
      labels_flat.reshape(1, r).astype(jnp.int32))
    return out[0, 0]


def clip_loss_fn(image_features, text_features, temperature):
    out = pl.pallas_call(
        functools.partial(_clip_kernel, float(temperature)),
        out_shape=jax.ShapeDtypeStruct((1, 1), jnp.float32),
        compiler_params=pltpu.CompilerParams(vmem_limit_bytes=_VMEM_LIMIT),
    )(image_features.astype(jnp.bfloat16), text_features.astype(jnp.bfloat16))
    return out[0, 0]


def cosine_l2_losses(binary_token, bs):
    b, t, d = binary_token.shape
    assert bs <= t and d >= 2, "loss_l2 indexing (permute(1,2,0)[b], rows 0/1) needs bs<=T, D>=2"
    cos, l2 = pl.pallas_call(
        functools.partial(_cosine_l2_kernel, int(bs)),
        out_shape=(jax.ShapeDtypeStruct((1, 1), jnp.float32),
                   jax.ShapeDtypeStruct((1, 1), jnp.float32)),
        compiler_params=pltpu.CompilerParams(vmem_limit_bytes=_VMEM_LIMIT),
    )(binary_token.astype(jnp.bfloat16))
    return cos[0, 0], l2[0, 0]


def mask_losses(point_logits, point_labels, num_masks):
    m, p = point_logits.shape
    tp = _choose_point_tile(m, p)
    grid = (pl.cdiv(p, tp),)

    ce_sum, dice_sum = pl.pallas_call(
        functools.partial(_mask_loss_kernel, int(p)),
        out_shape=(jax.ShapeDtypeStruct((1, 1), jnp.float32),
                   jax.ShapeDtypeStruct((1, 1), jnp.float32)),
        grid=grid,
        in_specs=[pl.BlockSpec((m, tp), lambda j: (0, j)),
                  pl.BlockSpec((m, tp), lambda j: (0, j))],
        out_specs=(pl.BlockSpec((1, 1), lambda j: (0, 0)),
                   pl.BlockSpec((1, 1), lambda j: (0, 0))),
        scratch_shapes=[pltpu.VMEM((1, 1), jnp.float32),           # bce sum
                        pltpu.VMEM((m, 1), jnp.float32),           # dice numerator per mask
                        pltpu.VMEM((m, 1), jnp.float32)],          # dice denominator per mask
        compiler_params=pltpu.CompilerParams(
            dimension_semantics=("arbitrary",),                    # point axis is a reduction
            vmem_limit_bytes=_VMEM_LIMIT),
    )(point_logits.astype(jnp.bfloat16),                           # bf16 streams (perf); exact
      point_labels.astype(jnp.bfloat16))                           # for 0/1 labels
    return ce_sum[0, 0] / num_masks, dice_sum[0, 0] / num_masks


# --------------------------------------------------------------------------- host-side helpers

def build_target_classes(B, Q, targets, indices, num_classes):
    """Batched scatter of matched labels into a [B, Q] 'no-object'-filled class map."""
    lens = [int(src.shape[0]) for src, _ in indices]
    target_classes = jnp.full((B, Q), num_classes, dtype=jnp.int32)
    if lens and len(set(lens)) == 1 and lens[0] > 0:
        src_idx = jnp.stack([jnp.asarray(src, jnp.int32) for src, _ in indices])        # [B,n]
        tgt_lab = jnp.stack([jnp.asarray(t['labels'], jnp.int32)[jnp.asarray(tgt)]
                             for t, (_, tgt) in zip(targets, indices)])                  # [B,n]
        batch = jnp.arange(B, dtype=jnp.int32)[:, None]
        target_classes = target_classes.at[batch, src_idx].set(tgt_lab)
    else:
        for b, (src, tgt) in enumerate(indices):
            if int(src.shape[0]) > 0:
                target_classes = target_classes.at[b, src].set(
                    targets[b]['labels'][tgt].astype(jnp.int32))
    return target_classes


def gather_matched_masks(pred_masks, targets, indices):
    """Batched gather of matched predicted / target masks -> [M, H, W] each."""
    B = pred_masks.shape[0]
    lens = [int(src.shape[0]) for src, _ in indices]
    if lens and len(set(lens)) == 1 and lens[0] > 0:
        src_idx = jnp.stack([jnp.asarray(src, jnp.int32) for src, _ in indices])        # [B,n]
        batch = jnp.arange(B, dtype=jnp.int32)[:, None]
        src_masks = pred_masks[batch, src_idx].reshape(-1, *pred_masks.shape[2:])
        tgt_masks = jnp.stack([t['masks'][jnp.asarray(tgt)]
                               for t, (_, tgt) in zip(targets, indices)])
        tgt_masks = tgt_masks.reshape(-1, *pred_masks.shape[2:]).astype(pred_masks.dtype)
    else:
        src_list, tgt_list = [], []
        for b, (src, tgt) in enumerate(indices):
            src_list.append(pred_masks[b][src])
            tgt_list.append(targets[b]['masks'][tgt].astype(pred_masks.dtype))
        src_masks = jnp.concatenate(src_list, axis=0)
        tgt_masks = jnp.concatenate(tgt_list, axis=0)
    return src_masks, tgt_masks


# --------------------------------------------------------------------------- criterion

class SetCriterionPallas:
    def __init__(self, num_classes, weight_dict, eos_coef, losses,
                 num_points, oversample_ratio, importance_sample_ratio):
        self.num_classes = num_classes
        self.weight_dict = weight_dict
        self.eos_coef = eos_coef
        self.losses = losses
        self.empty_weight = jnp.ones((num_classes + 1,), jnp.float32).at[-1].set(eos_coef)
        self.num_points = num_points
        self.oversample_ratio = oversample_ratio
        self.importance_sample_ratio = importance_sample_ratio
        self.temperature = 0.07

    # TODO(synk): Hungarian matcher (scipy linear_sum_assignment) has no clean Pallas
    # equivalent; identity matching is used instead.
    def _matcher(self, outputs, targets):
        return [(jnp.arange(t['labels'].shape[0]), jnp.arange(t['labels'].shape[0]))
                for t in targets]

    def loss_labels(self, outputs, targets, indices, num_masks, layer_id):
        src_logits = outputs['pred_logits'].astype(jnp.float32)    # [B, Q, C+1]
        B, Q, C1 = src_logits.shape
        target_classes = build_target_classes(B, Q, targets, indices, self.num_classes)
        loss_ce = weighted_cross_entropy(src_logits.reshape(B * Q, C1),
                                         target_classes.reshape(B * Q),
                                         self.num_classes, self.eos_coef)
        return {'loss_ce': loss_ce}

    def loss_masks(self, outputs, targets, indices, num_masks, layer_id):
        pred_masks = outputs['pred_masks']                         # [B, Q, H, W]
        src_masks, target_masks = gather_matched_masks(pred_masks, targets, indices)
        M = src_masks.shape[0]
        # TODO(synk): get_uncertain_point_coords_with_randomness / point_sample (grid_sample)
        # replaced by using every mask pixel as a point.
        point_logits = src_masks.reshape(M, -1)
        point_labels = target_masks.reshape(M, -1)
        loss_mask, loss_dice = mask_losses(point_logits, point_labels, num_masks)
        return {'loss_mask': loss_mask, 'loss_dice': loss_dice}

    def loss_clip(self, outputs, targets, indices, num_masks, layer_id):
        img = outputs['pred_queries']['image_features']
        txt = outputs['pred_queries']['text_features']
        return {'loss_clip': clip_loss_fn(img, txt, self.temperature)}

    def loss_cosine(self, outputs, targets, indices, num_masks, layer_id):
        bs = outputs['pred_logits'].shape[0]
        cos, _ = cosine_l2_losses(outputs['binary_token'], bs)
        return {'loss_cosine': cos}

    def loss_l2(self, outputs, targets, indices, num_masks, layer_id):
        bs = outputs['pred_logits'].shape[0]
        _, l2 = cosine_l2_losses(outputs['binary_token'], bs)
        return {'loss_l2': l2}

    # TODO(synk): loss_boxes (L1 + GIoU via box_ops) not wired; 'boxes' not in self.losses.
    def get_loss(self, loss, outputs, targets, indices, num_masks, layer_id):
        loss_map = {'labels': self.loss_labels, 'masks': self.loss_masks,
                    'clip': self.loss_clip, 'cosine': self.loss_cosine, 'l2': self.loss_l2}
        assert loss in loss_map, f'do you really want to compute {loss} loss?'
        return loss_map[loss](outputs, targets, indices, num_masks, layer_id)

    def _compute_losses(self, outputs, targets, indices, num_masks, layer_id):
        losses = {}
        remaining = list(self.losses)
        scalar_set = {'labels', 'clip', 'cosine', 'l2'}
        can_fuse = (scalar_set.issubset(set(remaining))
                    and 'pred_queries' in outputs and 'binary_token' in outputs)
        if can_fuse:
            # One pallas_call for all scalar losses: fewer launches, shared DMA window.
            src_logits = outputs['pred_logits'].astype(jnp.float32)
            B, Q, C1 = src_logits.shape
            target_classes = build_target_classes(B, Q, targets, indices, self.num_classes)
            tok = outputs['binary_token']
            assert B <= tok.shape[1] and tok.shape[2] >= 2
            ce, clip, cos, l2 = fused_scalar_losses(
                src_logits.reshape(B * Q, C1).T,                   # lane-dense [C+1, B*Q]
                target_classes.reshape(1, B * Q),
                outputs['pred_queries']['image_features'],
                outputs['pred_queries']['text_features'],
                tok, self.num_classes, self.eos_coef, self.temperature, B)
            losses.update({'loss_ce': ce, 'loss_clip': clip,
                           'loss_cosine': cos, 'loss_l2': l2})
            remaining = [l for l in remaining if l not in scalar_set]
        for loss in remaining:
            losses.update(self.get_loss(loss, outputs, targets, indices, num_masks, layer_id))
        return losses

    def forward(self, outputs, targets):
        outputs_without_aux = {k: v for k, v in outputs.items() if k != 'aux_outputs'}
        indices = self._matcher(outputs_without_aux, targets)
        num_masks = float(sum(int(t['labels'].shape[0]) for t in targets))
        num_masks = max(num_masks, 1.0)                            # clamp(min=1), world_size=1

        losses = self._compute_losses(outputs, targets, indices, num_masks, 9)

        if 'aux_outputs' in outputs:
            for i, aux_outputs in enumerate(outputs['aux_outputs']):
                aux_indices = self._matcher(aux_outputs, targets)
                l_dict = self._compute_losses(aux_outputs, targets, aux_indices, num_masks, i + 1)
                losses.update({k + f'_{i}': v for k, v in l_dict.items()})
        return losses


# --------------------------------------------------------------------------- main

if __name__ == "__main__":
    key = jax.random.PRNGKey(0)
    B, Q, num_classes = 2, 8, 4
    H = W = 16
    N, D = 8, 32
    T = 2          # num binary tokens (>= B, D >= 2, as required by loss_l2 indexing)
    n_t = 3        # targets per image

    k = jax.random.split(key, 8)
    outputs = {
        'pred_logits': jax.random.normal(k[0], (B, Q, num_classes + 1), jnp.float32),
        'pred_masks': jax.random.normal(k[1], (B, Q, H, W), jnp.float32),
        'pred_queries': {
            'image_features': jax.random.normal(k[2], (B, N, D), jnp.float32),
            'text_features': jax.random.normal(k[3], (B, N, D), jnp.float32),
        },
        'binary_token': jax.random.normal(k[4], (B, T, D), jnp.float32),
    }
    targets = []
    for b in range(B):
        labels = jax.random.randint(jax.random.fold_in(k[5], b), (n_t,), 0, num_classes)
        masks = (jax.random.uniform(jax.random.fold_in(k[6], b), (n_t, H, W)) > 0.5
                 ).astype(jnp.float32)
        targets.append({'labels': labels, 'masks': masks})

    criterion = SetCriterionPallas(
        num_classes=num_classes,
        weight_dict={'loss_ce': 1.0, 'loss_mask': 5.0, 'loss_dice': 5.0,
                     'loss_clip': 1.0, 'loss_cosine': 1.0, 'loss_l2': 1.0},
        eos_coef=0.1,
        losses=['labels', 'masks', 'clip', 'cosine', 'l2'],
        num_points=H * W,
        oversample_ratio=3.0,
        importance_sample_ratio=0.75,
    )

    losses = criterion.forward(outputs, targets)
    for name in sorted(losses):
        jax.block_until_ready(losses[name])
    print("KERNEL_OK")
</pallas_src>

<mosaic_0001>
module attributes {stable_mosaic.version = 11 : i64} {
  func.func @_fused_scalar_kernel(%arg0: memref<5x16xf32, #tpu.memory_space<vmem>>, %arg1: memref<1x16xi32, #tpu.memory_space<vmem>>, %arg2: memref<2x8x32xbf16, #tpu.memory_space<vmem>>, %arg3: memref<2x8x32xbf16, #tpu.memory_space<vmem>>, %arg4: memref<2x2x32xbf16, #tpu.memory_space<vmem>>, %arg5: memref<1x1xf32, #tpu.memory_space<vmem>>, %arg6: memref<1x1xf32, #tpu.memory_space<vmem>>, %arg7: memref<1x1xf32, #tpu.memory_space<vmem>>, %arg8: memref<1x1xf32, #tpu.memory_space<vmem>>) attributes {dimension_semantics = [], scalar_prefetch = 0 : i64, scratch_operands = 0 : i64, tpu.core_type = #tpu.core_type<tc>} {
    %c0 = arith.constant 0 : index
    %c0_0 = arith.constant 0 : index
    %0 = vector.load %arg0[%c0, %c0_0] : memref<5x16xf32, #tpu.memory_space<vmem>>, vector<5x16xf32>
    %c0_1 = arith.constant 0 : index
    %c0_2 = arith.constant 0 : index
    %1 = vector.load %arg1[%c0_1, %c0_2] : memref<1x16xi32, #tpu.memory_space<vmem>>, vector<1x16xi32>
    %2 = tpu.iota {dimensions = array<i32: 0>} : vector<5x16xi32>
    %3 = vector.broadcast %1 : vector<1x16xi32> to vector<5x16xi32>
    %4 = arith.cmpi eq, %2, %3 : vector<5x16xi32>
    %cst = arith.constant 0.000000e+00 : f32
    %5 = vector.broadcast %cst : f32 to vector<5x16xf32>
    %6 = arith.select %4, %0, %5 : vector<5x16xi1>, vector<5x16xf32>
    %cst_3 = arith.constant dense<0.000000e+00> : vector<16xf32>
    %7 = vector.multi_reduction <add>, %6, %cst_3 [0] : vector<5x16xf32> to vector<16xf32>
    %8 = vector.shape_cast %7 : vector<16xf32> to vector<1x16xf32>
    %cst_4 = arith.constant dense<0xFF800000> : vector<16xf32>
    %9 = vector.multi_reduction <maximumf>, %0, %cst_4 [0] : vector<5x16xf32> to vector<16xf32>
    %10 = vector.shape_cast %9 : vector<16xf32> to vector<1x16xf32>
    %11 = vector.broadcast %10 : vector<1x16xf32> to vector<5x16xf32>
    %12 = arith.subf %0, %11 : vector<5x16xf32>
    %13 = math.exp %12 : vector<5x16xf32>
    %cst_5 = arith.constant dense<0.000000e+00> : vector<16xf32>
    %14 = vector.multi_reduction <add>, %13, %cst_5 [0] : vector<5x16xf32> to vector<16xf32>
    %15 = vector.shape_cast %14 : vector<16xf32> to vector<1x16xf32>
    %16 = math.log %15 : vector<1x16xf32>
    %17 = arith.addf %16, %10 : vector<1x16xf32>
    %18 = arith.subf %17, %8 : vector<1x16xf32>
    %c4_i32 = arith.constant 4 : i32
    %19 = vector.broadcast %c4_i32 : i32 to vector<1x16xi32>
    %20 = arith.cmpi eq, %1, %19 : vector<1x16xi32>
    %cst_6 = arith.constant 1.000000e-01 : f32
    %cst_7 = arith.constant 1.000000e+00 : f32
    %21 = vector.broadcast %cst_6 : f32 to vector<1x16xf32>
    %22 = vector.broadcast %cst_7 : f32 to vector<1x16xf32>
    %23 = arith.select %20, %21, %22 : vector<1x16xi1>, vector<1x16xf32>
    %24 = arith.mulf %23, %18 : vector<1x16xf32>
    %25 = vector.shape_cast %24 : vector<1x16xf32> to vector<1x1x16xf32>
    %cst_8 = arith.constant dense<0.000000e+00> : vector<1xf32>
    %26 = vector.multi_reduction <add>, %25, %cst_8 [1, 2] : vector<1x1x16xf32> to vector<1xf32>
    %27 = vector.shape_cast %26 : vector<1xf32> to vector<1x1x1xf32>
    %28 = vector.extract %27[0, 0, 0] : f32 from vector<1x1x1xf32>
    %29 = vector.broadcast %28 : f32 to vector<1x1xf32>
    %30 = vector.shape_cast %23 : vector<1x16xf32> to vector<1x1x16xf32>
    %cst_9 = arith.constant dense<0.000000e+00> : vector<1xf32>
    %31 = vector.multi_reduction <add>, %30, %cst_9 [1, 2] : vector<1x1x16xf32> to vector<1xf32>
    %32 = vector.shape_cast %31 : vector<1xf32> to vector<1x1x1xf32>
    %33 = vector.extract %32[0, 0, 0] : f32 from vector<1x1x1xf32>
    %34 = vector.broadcast %33 : f32 to vector<1x1xf32>
    %35 = arith.divf %29, %34 : vector<1x1xf32>
    %c0_10 = arith.constant 0 : index
    %c0_11 = arith.constant 0 : index
    %36 = vector.load %arg5[%c0_10, %c0_11] : memref<1x1xf32, #tpu.memory_space<vmem>>, vector<1x1xf32>
    tpu.vector_store %arg5[%c0_10, %c0_11], %35 {strides = array<i32>} : memref<1x1xf32, #tpu.memory_space<vmem>>, vector<1x1xf32>,
    %c0_12 = arith.constant 0 : index
    %c0_13 = arith.constant 0 : index
    %c0_14 = arith.constant 0 : index
    %37 = vector.load %arg2[%c0_12, %c0_13, %c0_14] : memref<2x8x32xbf16, #tpu.memory_space<vmem>>, vector<2x8x32xbf16>
    %c0_15 = arith.constant 0 : index
    %c0_16 = arith.constant 0 : index
    %c0_17 = arith.constant 0 : index
    %38 = vector.load %arg3[%c0_15, %c0_16, %c0_17] : memref<2x8x32xbf16, #tpu.memory_space<vmem>>, vector<2x8x32xbf16>
    "tpu.trace_start"() <{level = 10 : i32, message = "bnd,bmd->bnm"}> : () -> ()
    %cst_18 = arith.constant dense<0.000000e+00> : vector<2x8x8xf32>
    %39 = tpu.matmul %38, %37, %cst_18 {dimension_numbers = #tpu.dot_dimension_numbers<[2], [2], [1], [1], [0, 0, 0, 1, 1, 1], [0], [0]>} : vector<2x8x32xbf16>, vector<2x8x32xbf16>, vector<2x8x8xf32> -> vector<2x8x8xf32>
    "tpu.trace_stop"() : () -> ()
    %cst_19 = arith.constant 14.2857141 : f32
    %40 = vector.broadcast %cst_19 : f32 to vector<2x8x8xf32>
    %41 = arith.mulf %39, %40 : vector<2x8x8xf32>
    "tpu.trace_start"() <{level = 10 : i32, message = "bnd,bmd->bnm"}> : () -> ()
    %cst_20 = arith.constant dense<0.000000e+00> : vector<2x8x8xf32>
    %42 = tpu.matmul %37, %37, %cst_20 {dimension_numbers = #tpu.dot_dimension_numbers<[2], [2], [1], [1], [0, 0, 0, 1, 1, 1], [0], [0]>} : vector<2x8x32xbf16>, vector<2x8x32xbf16>, vector<2x8x8xf32> -> vector<2x8x8xf32>
    %cst_21 = arith.constant dense<0.000000e+00> : vector<2x8x8xf32>
    %43 = tpu.matmul %38, %38, %cst_21 {dimension_numbers = #tpu.dot_dimension_numbers<[2], [2], [1], [1], [0, 0, 0, 1, 1, 1], [0], [0]>} : vector<2x8x32xbf16>, vector<2x8x32xbf16>, vector<2x8x8xf32> -> vector<2x8x8xf32>
    "tpu.trace_stop"() : () -> ()
    %44 = arith.addf %42, %43 : vector<2x8x8xf32>
    %cst_22 = arith.constant 3.500000e-02 : f32
    %45 = vector.broadcast %cst_22 : f32 to vector<2x8x8xf32>
    %46 = arith.mulf %44, %45 : vector<2x8x8xf32>
    %cst_23 = arith.constant dense<0xFF800000> : vector<2x8xf32>
    %47 = vector.multi_reduction <maximumf>, %46, %cst_23 [2] : vector<2x8x8xf32> to vector<2x8xf32>
    %48 = vector.shape_cast %47 : vector<2x8xf32> to vector<2x8x1xf32>
    %49 = vector.broadcast %48 : vector<2x8x1xf32> to vector<2x8x8xf32>
    %50 = arith.subf %46, %49 : vector<2x8x8xf32>
    %51 = math.exp %50 : vector<2x8x8xf32>
    %cst_24 = arith.constant dense<0.000000e+00> : vector<2x8xf32>
    %52 = vector.multi_reduction <add>, %51, %cst_24 [2] : vector<2x8x8xf32> to vector<2x8xf32>
    %53 = vector.shape_cast %52 : vector<2x8xf32> to vector<2x8x1xf32>
    %54 = vector.broadcast %53 : vector<2x8x1xf32> to vector<2x8x8xf32>
    %55 = arith.divf %51, %54 : vector<2x8x8xf32>
    %cst_25 = arith.constant dense<0xFF800000> : vector<2x8xf32>
    %56 = vector.multi_reduction <maximumf>, %41, %cst_25 [2] : vector<2x8x8xf32> to vector<2x8xf32>
    %57 = vector.shape_cast %56 : vector<2x8xf32> to vector<2x8x1xf32>
    %58 = vector.broadcast %57 : vector<2x8x1xf32> to vector<2x8x8xf32>
    %59 = arith.subf %41, %58 : vector<2x8x8xf32>
    %60 = math.exp %59 : vector<2x8x8xf32>
    %cst_26 = arith.constant dense<0.000000e+00> : vector<2x8xf32>
    %61 = vector.multi_reduction <add>, %60, %cst_26 [2] : vector<2x8x8xf32> to vector<2x8xf32>
    %62 = vector.shape_cast %61 : vector<2x8xf32> to vector<2x8x1xf32>
    %63 = math.log %62 : vector<2x8x1xf32>
    %64 = arith.addf %63, %57 : vector<2x8x1xf32>
    %cst_27 = arith.constant 0.000000e+00 : f32
    %65 = vector.broadcast %cst_27 : f32 to vector<2x8x8xf32>
    %66 = arith.subf %65, %55 : vector<2x8x8xf32>
    %67 = vector.broadcast %64 : vector<2x8x1xf32> to vector<2x8x8xf32>
    %68 = arith.subf %41, %67 : vector<2x8x8xf32>
    %69 = arith.mulf %66, %68 : vector<2x8x8xf32>
    %cst_28 = arith.constant dense<0.000000e+00> : vector<2x8xf32>
    %70 = vector.multi_reduction <add>, %69, %cst_28 [2] : vector<2x8x8xf32> to vector<2x8xf32>
    %cst_29 = arith.constant dense<0xFF800000> : vector<2x8xf32>
    %71 = vector.multi_reduction <maximumf>, %41, %cst_29 [1] : vector<2x8x8xf32> to vector<2x8xf32>
    %72 = vector.shape_cast %71 : vector<2x8xf32> to vector<2x1x8xf32>
    %73 = vector.broadcast %72 : vector<2x1x8xf32> to vector<2x8x8xf32>
    %74 = arith.subf %41, %73 : vector<2x8x8xf32>
    %75 = math.exp %74 : vector<2x8x8xf32>
    %cst_30 = arith.constant dense<0.000000e+00> : vector<2x8xf32>
    %76 = vector.multi_reduction <add>, %75, %cst_30 [1] : vector<2x8x8xf32> to vector<2x8xf32>
    %77 = vector.shape_cast %76 : vector<2x8xf32> to vector<2x1x8xf32>
    %78 = math.log %77 : vector<2x1x8xf32>
    %79 = arith.addf %78, %72 : vector<2x1x8xf32>
    %cst_31 = arith.constant 0.000000e+00 : f32
    %80 = vector.broadcast %cst_31 : f32 to vector<2x8x8xf32>
    %81 = arith.subf %80, %55 : vector<2x8x8xf32>
    %82 = vector.broadcast %79 : vector<2x1x8xf32> to vector<2x8x8xf32>
    %83 = arith.subf %41, %82 : vector<2x8x8xf32>
    %84 = arith.mulf %81, %83 : vector<2x8x8xf32>
    %cst_32 = arith.constant dense<0.000000e+00> : vector<2x8xf32>
    %85 = vector.multi_reduction <add>, %84, %cst_32 [1] : vector<2x8x8xf32> to vector<2x8xf32>
    %86 = arith.addf %70, %85 : vector<2x8xf32>
    %cst_33 = arith.constant 5.000000e-01 : f32
    %87 = vector.broadcast %cst_33 : f32 to vector<2x8xf32>
    %88 = arith.mulf %86, %87 : vector<2x8xf32>
    %89 = vector.shape_cast %88 : vector<2x8xf32> to vector<1x2x8xf32>
    %cst_34 = arith.constant dense<0.000000e+00> : vector<1xf32>
    %90 = vector.multi_reduction <add>, %89, %cst_34 [1, 2] : vector<1x2x8xf32> to vector<1xf32>
    %91 = vector.shape_cast %90 : vector<1xf32> to vector<1x1x1xf32>
    %92 = vector.extract %91[0, 0, 0] : f32 from vector<1x1x1xf32>
    %93 = vector.broadcast %92 : f32 to vector<1x1xf32>
    %cst_35 = arith.constant 1.600000e+01 : f32
    %94 = vector.broadcast %cst_35 : f32 to vector<1x1xf32>
    %95 = arith.divf %93, %94 : vector<1x1xf32>
    %c0_36 = arith.constant 0 : index
    %c0_37 = arith.constant 0 : index
    %96 = vector.load %arg6[%c0_36, %c0_37] : memref<1x1xf32, #tpu.memory_space<vmem>>, vector<1x1xf32>
    tpu.vector_store %arg6[%c0_36, %c0_37], %95 {strides = array<i32>} : memref<1x1xf32, #tpu.memory_space<vmem>>, vector<1x1xf32>,
    %c0_38 = arith.constant 0 : index
    %c0_39 = arith.constant 0 : index
    %c0_40 = arith.constant 0 : index
    %97 = vector.load %arg4[%c0_38, %c0_39, %c0_40] : memref<2x2x32xbf16, #tpu.memory_space<vmem>>, vector<2x2x32xbf16>
    %98 = arith.extf %97 : vector<2x2x32xbf16> to vector<2x2x32xf32>
    %99 = arith.mulf %98, %98 : vector<2x2x32xf32>
    %cst_41 = arith.constant dense<0.000000e+00> : vector<2x2xf32>
    %100 = vector.multi_reduction <add>, %99, %cst_41 [2] : vector<2x2x32xf32> to vector<2x2xf32>
    %101 = vector.shape_cast %100 : vector<2x2xf32> to vector<2x2x1xf32>
    %cst_42 = arith.constant 1.000000e-24 : f32
    %102 = vector.broadcast %cst_42 : f32 to vector<2x2x1xf32>
    %103 = arith.maximumf %101, %102 : vector<2x2x1xf32>
    %104 = math.rsqrt %103 : vector<2x2x1xf32>
    %105 = vector.broadcast %104 : vector<2x2x1xf32> to vector<2x2x32xf32>
    %106 = arith.mulf %98, %105 : vector<2x2x32xf32>
    %107 = arith.truncf %106 : vector<2x2x32xf32> to vector<2x2x32xbf16>
    "tpu.trace_start"() <{level = 10 : i32, message = "btd,bsd->bts"}> : () -> ()
    %cst_43 = arith.constant dense<0.000000e+00> : vector<2x2x2xf32>
    %108 = tpu.matmul %107, %107, %cst_43 {dimension_numbers = #tpu.dot_dimension_numbers<[2], [2], [1], [1], [0, 0, 0, 1, 1, 1], [0], [0]>} : vector<2x2x32xbf16>, vector<2x2x32xbf16>, vector<2x2x2xf32> -> vector<2x2x2xf32>
    "tpu.trace_stop"() : () -> ()
    %109 = tpu.iota {dimensions = array<i32: 1>} : vector<2x2x2xi32>
    %110 = tpu.iota {dimensions = array<i32: 2>} : vector<2x2x2xi32>
    %111 = arith.cmpi eq, %109, %110 : vector<2x2x2xi32>
    %cst_44 = arith.constant 0.000000e+00 : f32
    %112 = vector.broadcast %cst_44 : f32 to vector<2x2x2xf32>
    %113 = arith.select %111, %112, %108 : vector<2x2x2xi1>, vector<2x2x2xf32>
    %cst_45 = arith.constant dense<0.000000e+00> : vector<2x2xf32>
    %114 = vector.multi_reduction <add>, %113, %cst_45 [0] : vector<2x2x2xf32> to vector<2x2xf32>
    %115 = vector.shape_cast %114 : vector<2x2xf32> to vector<1x2x2xf32>
    %cst_46 = arith.constant dense<0.000000e+00> : vector<1xf32>
    %116 = vector.multi_reduction <add>, %115, %cst_46 [1, 2] : vector<1x2x2xf32> to vector<1xf32>
    %117 = vector.shape_cast %116 : vector<1xf32> to vector<1x1x1xf32>
    %118 = vector.extract %117[0, 0, 0] : f32 from vector<1x1x1xf32>
    %119 = vector.broadcast %118 : f32 to vector<1x1xf32>
    %cst_47 = arith.constant 1.250000e-01 : f32
    %120 = vector.broadcast %cst_47 : f32 to vector<1x1xf32>
    %121 = arith.mulf %119, %120 : vector<1x1xf32>
    %c0_48 = arith.constant 0 : index
    %c0_49 = arith.constant 0 : index
    %122 = vector.load %arg7[%c0_48, %c0_49] : memref<1x1xf32, #tpu.memory_space<vmem>>, vector<1x1xf32>
    tpu.vector_store %arg7[%c0_48, %c0_49], %121 {strides = array<i32>} : memref<1x1xf32, #tpu.memory_space<vmem>>, vector<1x1xf32>,
    %123 = arith.extf %97 : vector<2x2x32xbf16> to vector<2x2x32xf32>
    %124 = vector.extract_strided_slice %123 {offsets = [0, 0, 0], sizes = [2, 2, 1], strides = [1, 1, 1]} : vector<2x2x32xf32> to vector<2x2x1xf32>
    %125 = vector.extract_strided_slice %123 {offsets = [0, 0, 1], sizes = [2, 2, 1], strides = [1, 1, 1]} : vector<2x2x32xf32> to vector<2x2x1xf32>
    %126 = arith.subf %124, %125 : vector<2x2x1xf32>
    %127 = math.absf %126 : vector<2x2x1xf32>
    %cst_50 = arith.constant dense<0.000000e+00> : vector<2x1xf32>
    %128 = vector.multi_reduction <add>, %127, %cst_50 [0] : vector<2x2x1xf32> to vector<2x1xf32>
    %cst_51 = arith.constant 0.000000e+00 : f32
    %129 = vector.broadcast %cst_51 : f32 to vector<2x1xf32>
    %130 = arith.subf %129, %128 : vector<2x1xf32>
    %131 = vector.shape_cast %130 : vector<2x1xf32> to vector<1x2x1xf32>
    %cst_52 = arith.constant dense<0.000000e+00> : vector<1xf32>
    %132 = vector.multi_reduction <add>, %131, %cst_52 [1, 2] : vector<1x2x1xf32> to vector<1xf32>
    %133 = vector.shape_cast %132 : vector<1xf32> to vector<1x1x1xf32>
    %134 = vector.extract %133[0, 0, 0] : f32 from vector<1x1x1xf32>
    %135 = vector.broadcast %134 : f32 to vector<1x1xf32>
    %cst_53 = arith.constant 5.000000e-01 : f32
    %136 = vector.broadcast %cst_53 : f32 to vector<1x1xf32>
    %137 = arith.mulf %135, %136 : vector<1x1xf32>
    %c0_54 = arith.constant 0 : index
    %c0_55 = arith.constant 0 : index
    %138 = vector.load %arg8[%c0_54, %c0_55] : memref<1x1xf32, #tpu.memory_space<vmem>>, vector<1x1xf32>
    tpu.vector_store %arg8[%c0_54, %c0_55], %137 {strides = array<i32>} : memref<1x1xf32, #tpu.memory_space<vmem>>, vector<1x1xf32>,
    return
  }
}

</mosaic_0001>

<bundles_post_ra>
// kernel: tpu_custom_call.1
= control target key start
LH: loop header
LB: loop body
LE: loop exit
PB: predicated region body
PF: predicated region fallthrough
CT: control target
= control target key end

     0   :  { %14 = vsyncpa [#allocation3], 0  ;;  %s1137_s0 = inlined_call_operand.hbm [shape: f32[5,16], index: 0, kind: input, shape index: {}]   ;;  %s1138_s1 = inlined_call_operand.hbm [shape: s32[1,16], index: 1, kind: input, shape index: {}]   ;;  %s1139_s2 = inlined_call_operand.hbm [shape: bf16[2,8,32], index: 2, kind: input, shape index: {}]   ;;  %s1140_s3 = inlined_call_operand.hbm [shape: bf16[2,8,32], index: 3, kind: input, shape index: {}]   ;;  %s1141_s4 = inlined_call_operand.vmem [shape: bf16[2,2,32], index: 4, kind: input, shape index: {}]   ;;  %s1142_s5 = inlined_call_operand.hbm [shape: f32[1,1], index: 5, kind: output, shape index: {0}]   ;;  %s1143_s6 = inlined_call_operand.hbm [shape: f32[1,1], index: 6, kind: output, shape index: {1}]   ;;  %s1144_s7 = inlined_call_operand.hbm [shape: f32[1,1], index: 7, kind: output, shape index: {2}]   ;;  %s1145_s8 = inlined_call_operand.hbm [shape: f32[1,1], index: 8, kind: output, shape index: {3}]  }
   0x1   :  { %15 = vsyncpa [#allocation6], 0 }
   0x2   :  { %16 = vsyncpa [#allocation9], 0 }
   0x3   :  { %17 = vsyncpa [#allocation4], 0 }
   0x4   :  { %18 = vsyncpa [#allocation12], 0  ;;  %s36_s29 = sshll.u32 %s1138_s1, 4  ;;  %s37_s29 = int_to_ptr.hbm [resolvable:$true] %s36_s29 }
   0x5   :  { %19 = vsyncpa [#allocation15], 0  ;;  %s932_s30 = smov [#allocation5]   ;;  %s25_s12 = sshll.u32 %s1137_s0, 4  ;;  %s26_s12 = int_to_ptr.hbm [resolvable:$true] %s25_s12 }
   0x6   :  { %s38_s9 = sshll.u32 %s932_s30, 4  ;;  %s933_s13 = smov [#allocation2]   ;;  %s39_s9 = int_to_ptr.vmem [resolvable:$true] %s38_s9 }
   0x7   :  { %41 = dma.hbm_to_vmem [thread:$0]  %s37_s29, 16, %s39_s9, [#allocation6]  }
   0x8   :  { %s27_s14 = sshll.u32 %s933_s13, 4  ;;  %s46_s17 = sshll.u32 %s1139_s2, 4  ;;  %s28_s14 = int_to_ptr.vmem [resolvable:$true] %s27_s14  ;;  %s47_s17 = int_to_ptr.hbm [resolvable:$true] %s46_s17 }
   0x9   :  { %30 = dma.hbm_to_vmem [thread:$0]  %s26_s12, 128, %s28_s14, [#allocation3]  }
   0xa   :  { %s934_s1 = smov [#allocation7]   ;;  %s59_s21 = sshll.u32 %s1140_s3, 4  ;;  %s60_s21 = int_to_ptr.hbm [resolvable:$true] %s59_s21 }
   0xb   :  { %s48_s18 = sshll.u32 %s934_s1, 4  ;;  %s935_s22 = smov 64   ;;  %s49_s18 = int_to_ptr.vmem [resolvable:$true] %s48_s18 }
   0xc   :  { %s936_s0 = smov 4   ;;  %s937_s23 = smov [#allocation8]  }
   0xd   :  { %54 = dma.hbm_to_vmem [thread:$0]  %s47_s17, 128, %s49_s18, [#allocation6], %s935_s22, %s935_s22, %s936_s0  }
   0xe   :  { %s61_s24 = sshll.u32 %s937_s23, 4  ;;  %s62_s24 = int_to_ptr.vmem [resolvable:$true] %s61_s24 }
   0xf   :  { %67 = dma.hbm_to_vmem [thread:$0]  %s60_s21, 128, %s62_s24, [#allocation9], %s935_s22, %s935_s22, %s936_s0  }
  0x10   :  { %920 = dma.done.wait [#allocation3], 128  }
  0x11   :  { %921 = vsyncadd [#allocation3], 4294967168 }
  0x12   :  { %922 = dma.done.wait [#allocation6], 144  }
  0x13   :  { %923 = vsyncadd [#allocation6], 4294967152 }
  0x14   :  { %924 = dma.done.wait [#allocation9], 128  }
  0x15   :  { %925 = vsyncadd [#allocation9], 4294967168  ;;  %vm170_vm0 = vcmask 261120   ;;  %v166_v0 = vld [vmem:[#allocation7] sm:$0xf]  ;;  %vm265_vm1 = vcmask 64512  }
  0x16   :  { %v167_v1 = vld [vmem:[#allocation7 + $0x4] sm:$0xf]  ;;  %v168_v2 = vld [vmem:[#allocation8] sm:$0xf]  ;;  %v175_v3 = vsel %vm170_vm0, %v166_v0, 0  ;;  %vm468_vm2 = vcmask 254976  }
  0x17   :  { %v194_v4 = vsel %vm170_vm0, %v167_v1, 0  ;;  %v172_v5 = vsel %vm170_vm0, %v168_v2, 0  ;;  %v169_v6 = vld [vmem:[#allocation8 + $0x4] sm:$0xf]  ;;  %184 = vmatpush.bf16.xpose.msra.mxu0 %v175_v3  ;;  %v462_v23 = vld [vmem:[%s1141_s4] sm:$0x1] }
  0x18   :  { %203 = vmatpush.bf16.xpose.msra.mxu1 %v194_v4  ;;  %v191_v7 = vsel %vm170_vm0, %v169_v6, 0  ;;  %218 = vmatpush.bf16.xpose.msra.mxu2 %v172_v5  ;;  %v1030_v26 = vunpack.c.l.bf16 %v462_v23  ;;  %v463_v34 = vld [vmem:[%s1141_s4 + $0x1] sm:$0x1]  ;;  %s938_s4 = smov 127   ;;  %s941_s29 = smov [#allocation10]  }
  0x19   :  { %231 = vmatpush.bf16.xpose.msra.mxu3 %v191_v7  ;;  %v1039_v35 = vunpack.c.l.bf16 %v463_v34  ;;  %s588_s30 = sshll.u32 %s941_s29, 4  ;;  %s590_s11 = sshll.u32 %s1142_s5, 4  ;;  %s589_s30 = int_to_ptr.vmem [resolvable:$true] %s588_s30  ;;  %s591_s11 = int_to_ptr.hbm [resolvable:$true] %s590_s11 }
  0x1a   :  { %v466_v28 = vmul.f32 %v1030_v26, %v1030_v26  ;;  %s943_s5 = smov [#allocation11]   ;;  %s601_s15 = sshll.u32 %s1143_s6, 4  ;;  %s602_s15 = int_to_ptr.hbm [resolvable:$true] %s601_s15 }
  0x1b   :  { %v467_v36 = vmul.f32 %v1039_v35, %v1039_v35  ;;  %s599_s12 = sshll.u32 %s943_s5, 4  ;;  %s944_s16 = smov [#allocation13]   ;;  %s600_s12 = int_to_ptr.vmem [resolvable:$true] %s599_s12 }
  0x1c   :  { %v469_v30 = vsel %vm468_vm2, %v466_v28, 0.0  ;;  %s610_s17 = sshll.u32 %s944_s16, 4  ;;  %s612_s19 = sshll.u32 %s1144_s7, 4  ;;  %s611_s17 = int_to_ptr.vmem [resolvable:$true] %s610_s17  ;;  %s613_s19 = int_to_ptr.hbm [resolvable:$true] %s612_s19 }
  0x1d   :  { %470 = vadd.xlane.f32.xlu1 %v469_v30  ;;  %v472_v37 = vsel %vm468_vm2, %v467_v36, 0.0  ;;  %s623_s0 = sshll.u32 %s1145_s8, 4  ;;  %s945_s24 = smov [#allocation14]   ;;  %s624_s0 = int_to_ptr.hbm [resolvable:$true] %s623_s0 }
  0x1e   :  { %649 = vmatmul.msk.bf16.vlgmr.msra.gmra.mxu0 %vm170_vm0, %v168_v2  ;;  %s621_s2 = sshll.u32 %s945_s24, 4  ;;  %s622_s2 = int_to_ptr.vmem [resolvable:$true] %s621_s2 }
  0x1f   :  { %244 = vmatpush.bf16.xpose.msrb.mxu0 %v175_v3  ;;  %650 = vmatmul.msk.bf16.vlgmr.msra.gmra.mxu1 %vm170_vm0, %v169_v6 }
  0x20   :  { %257 = vmatpush.bf16.xpose.msrb.mxu1 %v194_v4  ;;  %651 = vmatmul.msk.bf16.vlgmr.msra.gmra.mxu2 %vm170_vm0, %v168_v2 }
  0x21   :  { %652 = vmatmul.msk.bf16.vlgmr.msra.gmra.mxu3 %vm170_vm0, %v169_v6 }
  0x25   :  { %473 = vadd.xlane.f32.xlu1 %v472_v37 }
  0x2e   :  { %653 = vmatmul.msk.bf16.vlgmr.msrb.gmra.mxu0 %vm170_vm0, %v166_v0 }
  0x2f   :  { %654 = vmatmul.msk.bf16.vlgmr.msrb.gmra.mxu1 %vm170_vm0, %v167_v1 }
  0x90   :  { %v471_v58 = vpop.xlane.xlu1 %470 }
  0x91   :  { %v475_v59 = vmax.f32 %v471_v58, 1e-24 }
  0x93   :  { %vm483_vm3 = vweird.f32 %v475_v59 }
  0x98   :  { %v474_v3 = vpop.xlane.xlu1 %473 }
  0x99   :  { %v476_v6 = vmax.f32 %v474_v3, 1e-24 }
  0x9b   :  { %v186_v8 = vpop.f32.mrf.mxu0  ;;  %vm493_vm6 = vweird.f32 %v476_v6 }
  0x9c   :  { %v205_v9 = vpop.f32.mrf.mxu1  ;;  %v1013_v10 = vmul.f32 14.285714, %v186_v8 }
  0x9d   :  { %v1020_v12 = vmul.f32 14.285714, %v205_v9 }
  0x9e   :  { %v1017_v11 = vsel %vm265_vm1, %v1013_v10, -inf }
  0x9f   :  { %315 = vmax.xlane.f32.xlu2 %v1017_v11  ;;  %v1024_v17 = vsel %vm265_vm1, %v1020_v12, -inf  ;;  %v350_v60 = vrot.slane %v1017_v11, 4 }
  0xa0   :  { %v356_v1 = vrot.slane %v1024_v17, 4 }
  0xa1   :  { %v351_v62 = vmax.f32 %v1017_v11, %v350_v60 }
  0xa2   :  { %v357_v5 = vmax.f32 %v1024_v17, %v356_v1 }
  0xa3   :  { %v220_v13 = vpop.f32.mrf.mxu2  ;;  %v188_v14 = vpop.f32.mrf.mxu0  ;;  %v352_v0 = vrot.slane %v351_v62, 2 }
  0xa4   :  { %v207_v15 = vpop.f32.mrf.mxu1  ;;  %v233_v16 = vpop.f32.mrf.mxu3  ;;  %v358_v9 = vrot.slane %v357_v5, 2 }
  0xa5   :  { %v353_v4 = vmax.f32 %v351_v62, %v352_v0 }
  0xa6   :  { %v359_v11 = vmax.f32 %v357_v5, %v358_v9 }
  0xa7   :  { %318 = vmax.xlane.f32.xlu2 %v1024_v17  ;;  %v354_v8 = vrot.slane %v353_v4, 1 }
  0xa9   :  { %v1065_v15 = vmax.f32 %v353_v4, %v354_v8 }
  0xab   :  { %v222_v18 = vpop.f32.mrf.mxu2  ;;  %v246_v19 = vpop.f32.mrf.mxu0  ;;  %v362_v17 = vsub.f32 %v1013_v10, %v1065_v15 }
  0xac   :  { %v259_v20 = vpop.f32.mrf.mxu1  ;;  %v247_v21 = vadd.f32 %v246_v19, %v220_v13  ;;  %v235_v22 = vpop.f32.mrf.mxu3 }
  0xad   :  { %v260_v25 = vadd.f32 %v259_v20, %v233_v16 }
  0xae   :  { %v263_v24 = vmul.f32 0.035, %v247_v21  ;;  %v360_v21 = vrot.slane %v359_v11, 1 }
  0xaf   :  { %v264_v29 = vmul.f32 0.035, %v260_v25 }
  0xb0   :  { %v266_v27 = vsel %vm265_vm1, %v263_v24, -inf  ;;  %v1070_v28 = vmax.f32 %v359_v11, %v360_v21 }
  0xb1   :  { %267 = vmax.xlane.f32.xlu0 %v266_v27  ;;  %v269_v33 = vsel %vm265_vm1, %v264_v29, -inf  ;;  %v364_v27 = vmul.f32 1.442695, %v362_v17 }
  0xb3   :  { %v248_v31 = vpop.f32.mrf.mxu0 }
  0xb4   :  { %v261_v32 = vpop.f32.mrf.mxu1 }
  0xb5   :  { %v363_v32 = vsub.f32 %v1020_v12, %v1070_v28 }
  0xb7   :  { %v366_v36 = vmul.f32 1.442695, %v363_v32 }
  0xb9   :  { %270 = vmax.xlane.f32.xlu0 %v269_v33 }
 0x112   :  { %v1043_v38 = vpop.xlane.xlu2 %315 }
 0x113   :  { %v320_v39 = vsub.f32 %v1013_v10, %v1043_v38 }
 0x115   :  { %v322_v40 = vmul.f32 1.442695, %v320_v39 }
 0x117   :  { %692 = vpow2.f32 %v322_v40 }
 0x11a   :  { %v1048_v43 = vpop.xlane.xlu2 %318 }
 0x11b   :  { %v321_v46 = vsub.f32 %v1020_v12, %v1048_v43 }
 0x11d   :  { %v693_v41 = vpop.eup %692  ;;  %v324_v48 = vmul.f32 1.442695, %v321_v46 }
 0x11e   :  { %v326_v42 = vsel %vm265_vm1, %v693_v41, 0.0 }
 0x11f   :  { %327 = vadd.xlane.f32.xlu2 %v326_v42 }
 0x124   :  { %v268_v44 = vpop.xlane.xlu0 %267 }
 0x125   :  { %v272_v45 = vsub.f32 %v263_v24, %v268_v44 }
 0x127   :  { %v274_v47 = vmul.f32 1.442695, %v272_v45 }
 0x129   :  { %694 = vpow2.f32 %v274_v47 }
 0x12a   :  { %696 = vpow2.f32 %v324_v48 }
 0x12c   :  { %v271_v49 = vpop.xlane.xlu0 %270 }
 0x12d   :  { %v273_v50 = vsub.f32 %v264_v29, %v271_v49 }
 0x12f   :  { %v1052_v51 = vpop.eup %694  ;;  %v276_v52 = vmul.f32 1.442695, %v273_v50 }
 0x130   :  { %v278_v53 = vsel %vm265_vm1, %v1052_v51, 0.0  ;;  %v697_v54 = vpop.eup %696 }
 0x131   :  { %698 = vpow2.f32 %v276_v52  ;;  %279 = vadd.xlane.f32.xlu0 %v278_v53  ;;  %v329_v56 = vsel %vm265_vm1, %v697_v54, 0.0  ;;  %v89_v53 = vlaneseq }
 0x132   :  { %700 = vrsqrt.f32 %v475_v59 }
 0x133   :  { %702 = vrsqrt.f32 %v476_v6  ;;  %v1082_v54 = vshrl.u32 %v89_v53, 7 }
 0x134   :  { %704 = vpow2.f32 %v364_v27 }
 0x135   :  { %706 = vpow2.f32 %v366_v36  ;;  %681 = vset.pattern.permute.xlu0 %v1082_v54  ;;  %682 = vset.pattern.permute.xlu1 %v1082_v54 }
 0x137   :  { %v1056_v55 = vpop.eup %698 }
 0x138   :  { %v281_v57 = vsel %vm265_vm1, %v1056_v55, 0.0  ;;  %v701_v61 = vpop.eup %700 }
 0x139   :  { %330 = vadd.xlane.f32.xlu0 %v329_v56  ;;  %282 = vadd.xlane.f32.xlu1 %v281_v57  ;;  %v478_v63 = vmul.f32 %v701_v61, %v475_v59  ;;  %vm484_vm4 = vweird.f32 %v701_v61  ;;  %v703_v14 = vpop.eup %702 }
 0x13a   :  { %vm485_vm5 = vmor %vm483_vm3, %vm484_vm4  ;;  %v488_v16 = vmul.f32 %v703_v14, %v476_v6  ;;  %vm494_vm7 = vweird.f32 %v703_v14  ;;  %v705_v39 = vpop.eup %704  ;;  %vm94_vm3 = vcmask 126976  }
 0x13b   :  { %v479_v2 = vmul.f32 %v701_v61, %v478_v63  ;;  %vm495_vm8 = vmor %vm493_vm6, %vm494_vm7  ;;  %v368_v40 = vsel %vm265_vm1, %v705_v39, 0.0  ;;  %v707_v42 = vpop.eup %706  ;;  %vm126_vm6 = vcmask 122880   ;;  %vm565_vm7 = vcmask 1024  }
 0x13c   :  { %v489_v19 = vmul.f32 %v703_v14, %v488_v16  ;;  %v369_v41 = vrot.slane %v368_v40, 4  ;;  %v375_v45 = vsel %vm265_vm1, %v707_v42, 0.0 }
 0x13d   :  { %v480_v7 = vmul.f32 0.5, %v479_v2  ;;  %v376_v47 = vrot.slane %v375_v45, 4 }
 0x13e   :  { %v490_v23 = vmul.f32 0.5, %v489_v19  ;;  %v370_v44 = vadd.f32 %v369_v41, %v368_v40 }
 0x13f   :  { %v481_v13 = vsub.f32 1.5, %v480_v7  ;;  %v377_v49 = vadd.f32 %v376_v47, %v375_v45 }
 0x140   :  { %v491_v25 = vsub.f32 1.5, %v490_v23  ;;  %v371_v46 = vrot.slane %v370_v44, 2 }
 0x141   :  { %v482_v18 = vmul.f32 %v701_v61, %v481_v13  ;;  %v378_v52 = vrot.slane %v377_v49, 2 }
 0x142   :  { %v492_v30 = vmul.f32 %v703_v14, %v491_v25  ;;  %v372_v48 = vadd.f32 %v371_v46, %v370_v44 }
 0x143   :  { %v486_v20 = vsel %vm485_vm5, %v701_v61, %v482_v18  ;;  %v379_v57 = vadd.f32 %v378_v52, %v377_v49 }
 0x144   :  { %v497_v22 = vmul.f32 %v486_v20, %v1030_v26  ;;  %v496_v31 = vsel %vm495_vm8, %v703_v14, %v492_v30  ;;  %v373_v50 = vrot.slane %v372_v48, 1  ;;  %vm438_vm8 = vcmask 1041409  }
 0x145   :  { %v498_v33 = vmul.f32 %v496_v31, %v1039_v35  ;;  %v380_v59 = vrot.slane %v379_v57, 1 }
 0x146   :  { %v499_v24 = vpack.c.bf16 %v497_v22, %v497_v22  ;;  %v374_v56 = vadd.f32 %v373_v50, %v372_v48 }
 0x147   :  { %v500_v34 = vpack.c.bf16 %v498_v33, %v498_v33  ;;  %v381_v61 = vadd.f32 %v380_v59, %v379_v57 }
 0x148   :  { %v502_v29 = vsel %vm170_vm0, %v499_v24, 0  ;;  %708 = vlog2.f32 %v374_v56 }
 0x149   :  { %511 = vmatpush.bf16.xpose.msrb.mxu2 %v502_v29  ;;  %v518_v37 = vsel %vm170_vm0, %v500_v34, 0 }
 0x14a   :  { %527 = vmatpush.bf16.xpose.msrb.mxu3 %v518_v37 }
 0x14e   :  { %v709_v62 = vpop.eup %708 }
 0x14f   :  { %v383_v5 = vmul.f32 0.6931472, %v709_v62 }
 0x150   :  { %655 = vmatmul.msk.bf16.vlgmr.msrb.gmra.mxu2 %vm170_vm0, %v499_v24 }
 0x151   :  { %656 = vmatmul.msk.bf16.vlgmr.msrb.gmra.mxu3 %vm170_vm0, %v500_v34  ;;  %v386_v16 = vadd.f32 %v383_v5, %v1065_v15 }
 0x153   :  { %v388_v31 = vsub.f32 %v1013_v10, %v386_v16 }
 0x192   :  { %v328_v58 = vpop.xlane.xlu2 %327 }
 0x1a4   :  { %v280_v60 = vpop.xlane.xlu0 %279 }
 0x1a5   :  { %710 = vrcp.f32 %v280_v60  ;;  %v295_v7 = vand.u32 2147483648, %v280_v60  ;;  %v293_v9 = vand.u32 2147483647, %v280_v60  ;;  %vm289_vm10 = vweird.f32 %v280_v60 }
 0x1a6   :  { %712 = vlog2.f32 %v328_v58 }
 0x1a7   :  { %714 = vlog2.f32 %v381_v61  ;;  %v296_v19 = vor.u32 1.1754944e-38, %v295_v7  ;;  %vm294_vm12 = vcmp.eq.f32.partialorder %v293_v9, 8.507059e+37  ;;  %v683_v7 = vpack.i.bf16 %v1039_v35, %v1030_v26  ;;  %v87_v9 = vld [vmem:[#allocation2] sm:$0x1f] }
 0x1ab   :  { %v711_v63 = vpop.eup %710 }
 0x1ac   :  { %v713_v0 = vpop.eup %712  ;;  %v285_v1 = vmul.f32 %v711_v63, %v280_v60  ;;  %v283_v2 = vpop.xlane.xlu1 %282  ;;  %vm290_vm9 = vweird.f32 %v711_v63 }
 0x1ad   :  { %v331_v3 = vpop.xlane.xlu0 %330  ;;  %716 = vrcp.f32 %v283_v2  ;;  %v333_v6 = vmul.f32 0.6931472, %v713_v0  ;;  %v715_v13 = vpop.eup %714  ;;  %vm291_vm11 = vmor %vm289_vm10, %vm290_vm9  ;;  %v308_v27 = vand.u32 2147483647, %v283_v2  ;;  %v310_v29 = vand.u32 2147483648, %v283_v2 }
 0x1ae   :  { %v286_v4 = vsub.f32 1.0, %v285_v1  ;;  %718 = vlog2.f32 %v331_v3  ;;  %v385_v23 = vmul.f32 0.6931472, %v715_v13  ;;  %vm304_vm14 = vweird.f32 %v283_v2 }
 0x1af   :  { %v336_v18 = vadd.f32 %v333_v6, %v1043_v38  ;;  %v311_v39 = vor.u32 1.1754944e-38, %v310_v29  ;;  %vm309_vm0 = vcmp.eq.f32.partialorder %v308_v27, 8.507059e+37  ;;  %v102_v13 = vsel %vm94_vm3, %v87_v9, -inf  ;;  %v691_v29 = vld [vmem:[#allocation5] ss:$0 sm:$0xff] }
 0x1b0   :  { %v287_v8 = vmul.f32 %v711_v63, %v286_v4  ;;  %v387_v37 = vadd.f32 %v385_v23, %v1070_v28  ;;  %vm92_vm4 = vcmp.eq.s32.totalorder %v1082_v54, %v691_v29  ;;  %vm441_vm9 = vcmask 58368  }
 0x1b1   :  { %v340_v30 = vsub.f32 %v1013_v10, %v336_v18 }
 0x1b2   :  { %v288_v14 = vadd.f32 %v711_v63, %v287_v8  ;;  %v389_v28 = vsub.f32 %v1020_v12, %v387_v37 }
 0x1b3   :  { %v717_v11 = vpop.eup %716 }
 0x1b4   :  { %v300_v20 = vmul.f32 %v717_v11, %v283_v2  ;;  %v292_v17 = vsel %vm291_vm11, %v711_v63, %v288_v14  ;;  %v719_v21 = vpop.eup %718  ;;  %vm305_vm13 = vweird.f32 %v717_v11  ;;  %v103_v14 = vrot.slane %v102_v13, 4 }
 0x1b5   :  { %v297_v22 = vsel %vm294_vm12, %v296_v19, %v292_v17  ;;  %v335_v38 = vmul.f32 0.6931472, %v719_v21  ;;  %vm306_vm15 = vmor %vm304_vm14, %vm305_vm13  ;;  %v939_v17 = vmov 0   ;;  %vm164_vm14 = vcmask 0  }
 0x1b6   :  { %v301_v24 = vsub.f32 1.0, %v300_v20  ;;  %v298_v25 = vmul.f32 %v1052_v51, %v297_v22  ;;  %v104_v16 = vmax.f32 %v102_v13, %v103_v14  ;;  %688 = vset.pattern.permute.xlu2 %v939_v17 }
 0x1b7   :  { %v337_v51 = vadd.f32 %v335_v38, %v1048_v43 }
 0x1b8   :  { %v302_v15 = vmul.f32 %v717_v11, %v301_v24  ;;  %v338_v32 = vsub.f32 0.0, %v298_v25  ;;  %v105_v18 = vrot.slane %v104_v16, 2 }
 0x1b9   :  { %v341_v48 = vsub.f32 %v1020_v12, %v337_v51  ;;  %v1101_v12 = vand.u32 127, %v89_v53 }
 0x1ba   :  { %v342_v33 = vmul.f32 %v340_v30, %v338_v32  ;;  %v390_v34 = vmul.f32 %v388_v31, %v338_v32  ;;  %v303_v36 = vadd.f32 %v717_v11, %v302_v15  ;;  %v106_v19 = vmax.f32 %v104_v16, %v105_v18 }
 0x1bb   :  { %vm533_vm2 = vcmp.eq.s32.totalorder %v1082_v54, %v1101_v12 }
 0x1bc   :  { %v344_v40 = vsel %vm265_vm1, %v342_v33, 0.0  ;;  %v392_v41 = vsel %vm265_vm1, %v390_v34, 0.0  ;;  %v307_v10 = vsel %vm306_vm15, %v717_v11, %v303_v36  ;;  %v107_v20 = vrot.slane %v106_v19, 1 }
 0x1bd   :  { %v393_v42 = vrot.slane %v392_v41, 4  ;;  %345 = vadd.xlane.f32.xlu1 %v344_v40  ;;  %v312_v44 = vsel %vm309_vm0, %v311_v39, %v307_v10  ;;  %v93_v34 = vsel %vm92_vm4, %v87_v9, 0.0 }
 0x1be   :  { %v313_v45 = vmul.f32 %v1056_v55, %v312_v44  ;;  %v108_v21 = vmax.f32 %v106_v19, %v107_v20  ;;  %v95_v37 = vsel %vm94_vm3, %v93_v34, 0.0 }
 0x1bf   :  { %v394_v46 = vadd.f32 %v393_v42, %v392_v41  ;;  %v96_v51 = vrot.slane %v95_v37, 4 }
 0x1c0   :  { %v339_v47 = vsub.f32 0.0, %v313_v45  ;;  %v109_v22 = vsub.f32 %v87_v9, %v108_v21 }
 0x1c1   :  { %v395_v49 = vrot.slane %v394_v46, 2  ;;  %v97_v44 = vadd.f32 %v96_v51, %v95_v37 }
 0x1c2   :  { %v343_v50 = vmul.f32 %v341_v48, %v339_v47  ;;  %v391_v52 = vmul.f32 %v389_v28, %v339_v47  ;;  %v110_v23 = vmul.f32 1.442695, %v109_v22 }
 0x1c3   :  { %v396_v43 = vadd.f32 %v395_v49, %v394_v46  ;;  %v98_v46 = vrot.slane %v97_v44, 2  ;;  %v88_v49 = vld [vmem:[#allocation5] sm:$0x1] }
 0x1c4   :  { %v347_v56 = vsel %vm265_vm1, %v343_v50, 0.0  ;;  %v399_v57 = vsel %vm265_vm1, %v391_v52, 0.0  ;;  %vm536_vm1 = vcmask 9216   ;;  %720 = vpow2.f32 %v110_v23 }
 0x1c5   :  { %v400_v58 = vrot.slane %v399_v57, 4  ;;  %348 = vadd.xlane.f32.xlu2 %v347_v56  ;;  %v397_v59 = vrot.slane %v396_v43, 1  ;;  %v99_v47 = vadd.f32 %v98_v46, %v97_v44  ;;  %vm123_vm5 = vcmp.eq.s32.totalorder %v88_v49, 4 }
 0x1c6   :  { %v940_v56 = vmov 1.0  }
 0x1c7   :  { %v398_v60 = vadd.f32 %v397_v59, %v396_v43  ;;  %v401_v61 = vadd.f32 %v400_v58, %v399_v57  ;;  %v100_v48 = vrot.slane %v99_v47, 1  ;;  %v124_v57 = vsel %vm123_vm5, 0.1, %v940_v56 }
 0x1c9   :  { %412 = vperm.xlu0 %681, %v398_v60   ;;  %v402_v55 = vrot.slane %v401_v61, 2  ;;  %v101_v50 = vadd.f32 %v100_v48, %v99_v47 }
 0x1ca   :  { %v721_v24 = vpop.eup %720 }
 0x1cb   :  { %v403_v62 = vadd.f32 %v402_v55, %v401_v61  ;;  %v112_v25 = vsel %vm94_vm3, %v721_v24, 0.0 }
 0x1cc   :  { %v113_v27 = vrot.slane %v112_v25, 4 }
 0x1cd   :  { %v404_v63 = vrot.slane %v403_v62, 1 }
 0x1ce   :  { %v114_v30 = vadd.f32 %v113_v27, %v112_v25 }
 0x1cf   :  { %v405_v0 = vadd.f32 %v404_v63, %v403_v62 }
 0x1d0   :  { %v115_v32 = vrot.slane %v114_v30, 2 }
 0x1d1   :  { %690 = vset.pattern.permute.xlu0 %v939_v17 }
 0x1d2   :  { %v116_v36 = vadd.f32 %v115_v32, %v114_v30 }
 0x1d3   :  { %v513_v1 = vpop.f32.mrf.mxu2 }
 0x1d4   :  { %v534_v2 = vsel %vm533_vm2, 0.0, %v513_v1  ;;  %v529_v5 = vpop.f32.mrf.mxu3  ;;  %v117_v39 = vrot.slane %v116_v36, 1 }
 0x1d5   :  { %v537_v3 = vsel %vm536_vm1, %v534_v2, 0.0  ;;  %v535_v6 = vsel %vm533_vm2, 0.0, %v529_v5 }
 0x1d6   :  { %418 = vperm.xlu1 %682, %v405_v0   ;;  %v538_v8 = vsel %vm536_vm1, %v535_v6, 0.0  ;;  %v118_v42 = vadd.f32 %v117_v39, %v116_v36 }
 0x1d7   :  { %v539_v53 = vadd.f32 %v538_v8, %v537_v3  ;;  %v138_v3 = vsel %vm126_vm6, %v124_v57, 0.0 }
 0x1d8   :  { %722 = vlog2.f32 %v118_v42 }
 0x1d9   :  { %v540_v61 = vsel %vm536_vm1, %v539_v53, 0.0 }
 0x1db   :  { %v515_v4 = vpop.f32.mrf.mxu2 }
 0x1dc   :  { %v531_v11 = vpop.f32.mrf.mxu3 }
 0x1dd   :  { %684 = vrot.lane.b32.xlu2 %v683_v7, %s938_s4 }
 0x1de   :  { %689 = vset.pattern.permute.xlu1 %v939_v17  ;;  %v723_v54 = vpop.eup %722 }
 0x1df   :  { %v120_v28 = vmul.f32 0.6931472, %v723_v54 }
 0x1e1   :  { %v121_v52 = vadd.f32 %v120_v28, %v108_v21 }
 0x1e3   :  { %v122_v43 = vsub.f32 %v121_v52, %v101_v50 }
 0x1e5   :  { %v125_v58 = vmul.f32 %v124_v57, %v122_v43 }
 0x1e7   :  { %v127_v59 = vsel %vm126_vm6, %v125_v58, 0.0 }
 0x230   :  { %v346_v31 = vpop.xlane.xlu1 %345 }
 0x238   :  { %v349_v40 = vpop.xlane.xlu2 %348 }
 0x23b   :  { %v413_v15 = vpop.permute.xlu0 %412 }
 0x23c   :  { %v422_v38 = vadd.f32 %v413_v15, %v346_v31 }
 0x23e   :  { %v424_v33 = vmul.f32 0.5, %v422_v38 }
 0x240   :  { %429 = vperm.xlu2 %688, %v424_v33   ;;  %v685_v60 = vpop.permute.xlu2 %684 }
 0x241   :  { %v687_v55 = vunpack.i.h.bf16 %v685_v60  ;;  %v686_v62 = vunpack.i.l.bf16 %v685_v60 }
 0x243   :  { %v562_v63 = vsub.f32 %v1039_v35, %v687_v55  ;;  %v561_v0 = vsub.f32 %v1030_v26, %v686_v62 }
 0x245   :  { %v564_v1 = vand.u32 2147483647, %v562_v63  ;;  %v563_v2 = vand.u32 2147483647, %v561_v0  ;;  %v942_v63 = vmov 16.0  }
 0x247   :  { %v566_v4 = vsel %vm565_vm7, %v563_v2, 0.0  ;;  %v567_v5 = vsel %vm565_vm7, %v564_v1, 0.0 }
 0x248   :  { %v419_v41 = vpop.permute.xlu1 %418  ;;  %v568_v6 = vadd.f32 %v567_v5, %v566_v4 }
 0x249   :  { %v423_v10 = vadd.f32 %v419_v41, %v349_v40 }
 0x24a   :  { %v569_v7 = vsub.f32 0.0, %v568_v6 }
 0x24b   :  { %v425_v45 = vmul.f32 0.5, %v423_v10 }
 0x24c   :  { %v570_v8 = vsel %vm565_vm7, %v569_v7, 0.0 }
 0x24d   :  { %432 = vperm.xlu1 %689, %v425_v45  }
 0x269   :  { %128 = vadd.xlane.f32.xlu2 %v127_v59 }
 0x271   :  { %541 = vadd.xlane.f32.xlu2 %v540_v61 }
 0x277   :  { %139 = vadd.xlane.f32.xlu1 %v138_v3 }
 0x27f   :  { %571 = vadd.xlane.f32.xlu1 %v570_v8 }
 0x29a   :  { %v430_v9 = vpop.permute.xlu2 %429 }
 0x29b   :  { %v436_v13 = vperm.slane %v430_v9, %v1101_v12 }
 0x2bf   :  { %v433_v53 = vpop.permute.xlu1 %432 }
 0x2c0   :  { %v437_v35 = vperm.slane %v433_v53, %v1101_v12 }
 0x2c2   :  { %v439_v26 = vsel %vm438_vm8, %v437_v35, %v436_v13 }
 0x2c3   :  { %v442_v14 = vsel %vm441_vm9, %v439_v26, 0.0 }
 0x2c4   :  { %443 = vadd.xlane.f32.xlu0 %v442_v14 }
 0x2dc   :  { %v129_v11 = vpop.xlane.xlu2 %128 }
 0x2dd   :  { %v130_v16 = vrot.slane %v129_v11, 4 }
 0x2df   :  { %v131_v18 = vadd.f32 %v130_v16, %v129_v11 }
 0x2e1   :  { %v132_v19 = vrot.slane %v131_v18, 2 }
 0x2e3   :  { %v133_v20 = vadd.f32 %v132_v19, %v131_v18 }
 0x2e4   :  { %v542_v12 = vpop.xlane.xlu2 %541 }
 0x2e5   :  { %v134_v17 = vrot.slane %v133_v20, 1  ;;  %v543_v38 = vrot.slane %v542_v12, 4 }
 0x2e7   :  { %v135_v21 = vadd.f32 %v134_v17, %v133_v20  ;;  %v544_v33 = vadd.f32 %v543_v38, %v542_v12 }
 0x2e9   :  { %657 = vpush %v135_v21  ;;  %v545_v39 = vrot.slane %v544_v33, 2 }
 0x2ea   :  { %v140_v22 = vpop.xlane.xlu1 %139 }
 0x2eb   :  { %v141_v23 = vrot.slane %v140_v22, 4  ;;  %v546_v46 = vadd.f32 %v545_v39, %v544_v33 }
 0x2ed   :  { %v142_v24 = vadd.f32 %v141_v23, %v140_v22  ;;  %v547_v52 = vrot.slane %v546_v46, 1 }
 0x2ef   :  { %v143_v25 = vrot.slane %v142_v24, 2  ;;  %v548_v61 = vadd.f32 %v547_v52, %v546_v46 }
 0x2f1   :  { %v144_v27 = vadd.f32 %v143_v25, %v142_v24 }
 0x2f2   :  { %v572_v31 = vpop.xlane.xlu1 %571 }
 0x2f3   :  { %v145_v29 = vrot.slane %v144_v27, 1  ;;  %v573_v32 = vrot.slane %v572_v31, 4 }
 0x2f5   :  { %v146_v30 = vadd.f32 %v145_v29, %v144_v27  ;;  %v574_v34 = vadd.f32 %v573_v32, %v572_v31 }
 0x2f7   :  { %659 = vpush %v146_v30  ;;  %v575_v40 = vrot.slane %v574_v34, 2 }
 0x2f9   :  { %v576_v54 = vadd.f32 %v575_v40, %v574_v34 }
 0x2fb   :  { %v577_v57 = vrot.slane %v576_v54, 1 }
 0x2fd   :  { %v578_v62 = vadd.f32 %v577_v57, %v576_v54 }
 0x31a   :  { %s1118_s27 = spop %657 }
 0x31b   :  { %v137_v58 = vstv %s1118_s27 }
 0x328   :  { %s660_s28 = spop %659 }
 0x329   :  { %v148_v15 = vstv %s660_s28 }
 0x32a   :  { %724 = vrcp.f32 %v148_v15  ;;  %vm154_vm10 = vweird.f32 %v148_v15  ;;  %v160_v45 = vand.u32 2147483648, %v148_v15  ;;  %v158_v47 = vand.u32 2147483647, %v148_v15 }
 0x32b   :  { %726 = vrcp.f32 %v942_v63 }
 0x32c   :  { %v161_v50 = vor.u32 1.1754944e-38, %v160_v45  ;;  %vm159_vm13 = vcmp.eq.f32.partialorder %v158_v47, 8.507059e+37 }
 0x330   :  { %v725_v36 = vpop.eup %724 }
 0x331   :  { %v150_v37 = vmul.f32 %v725_v36, %v148_v15  ;;  %vm155_vm11 = vweird.f32 %v725_v36  ;;  %v727_v0 = vpop.eup %726 }
 0x332   :  { %vm156_vm12 = vmor %vm154_vm10, %vm155_vm11  ;;  %v454_v1 = vmul.f32 16.0, %v727_v0  ;;  %vm458_vm15 = vweird.f32 %v727_v0 }
 0x333   :  { %v151_v10 = vsub.f32 1.0, %v150_v37 }
 0x334   :  { %v455_v2 = vsub.f32 1.0, %v454_v1 }
 0x335   :  { %v152_v44 = vmul.f32 %v725_v36, %v151_v10 }
 0x336   :  { %v456_v3 = vmul.f32 %v727_v0, %v455_v2 }
 0x337   :  { %v444_v51 = vpop.xlane.xlu0 %443  ;;  %v153_v28 = vadd.f32 %v725_v36, %v152_v44 }
 0x338   :  { %v445_v41 = vrot.slane %v444_v51, 4  ;;  %v457_v4 = vadd.f32 %v727_v0, %v456_v3 }
 0x339   :  { %v157_v43 = vsel %vm156_vm12, %v725_v36, %v153_v28 }
 0x33a   :  { %v446_v42 = vadd.f32 %v445_v41, %v444_v51  ;;  %v162_v60 = vsel %vm159_vm13, %v161_v50, %v157_v43  ;;  %v459_v5 = vsel %vm458_vm15, %v727_v0, %v457_v4 }
 0x33b   :  { %v163_v55 = vmul.f32 %v162_v60, %v137_v58 }
 0x33c   :  { %v447_v48 = vrot.slane %v446_v42, 2 }
 0x33d   :  { %165 = vst.msk [vmem:[#allocation10] sm:$0x1] %vm164_vm14, %v163_v55 }
 0x33e   :  { %v448_v49 = vadd.f32 %v447_v48, %v446_v42  ;;  %593 = dma.vmem_to_hbm [thread:$0]  %s589_s30, 16, %s591_s11, [#allocation4]  }
 0x340   :  { %v449_v56 = vrot.slane %v448_v49, 1 }
 0x342   :  { %v450_v59 = vadd.f32 %v449_v56, %v448_v49 }
 0x344   :  { %661 = vpush %v450_v59 }
 0x345   :  { %663 = vpush %v548_v61 }
 0x346   :  { %665 = vpush %v578_v62 }
 0x375   :  { %s662_s20 = spop %661 }
 0x376   :  { %v452_v6 = vstv %s662_s20  ;;  %s664_s23 = spop %663 }
 0x377   :  { %v460_v7 = vmul.f32 %v459_v5, %v452_v6  ;;  %v550_v8 = vstv %s664_s23  ;;  %s666_s6 = spop %665 }
 0x378   :  { %v551_v9 = vmul.f32 0.125, %v550_v8  ;;  %v580_v53 = vstv %s666_s6 }
 0x379   :  { %461 = vst.msk [vmem:[#allocation11] sm:$0x1] %vm164_vm14, %v460_v7  ;;  %v581_v13 = vmul.f32 0.5, %v580_v53 }
 0x37a   :  { %552 = vst.msk [vmem:[#allocation13] sm:$0x1] %vm164_vm14, %v551_v9  ;;  %604 = dma.vmem_to_hbm [thread:$0]  %s600_s12, 16, %s602_s15, [#allocation12]  }
 0x37b   :  { %582 = vst.msk [vmem:[#allocation14] sm:$0x1] %vm164_vm14, %v581_v13  ;;  %615 = dma.vmem_to_hbm [thread:$0]  %s611_s17, 16, %s613_s19, [#allocation12]  }
 0x37c   :  { %626 = dma.vmem_to_hbm [thread:$0]  %s622_s2, 16, %s624_s0, [#allocation15]  }
 0x37d   :  { %926 = dma.done.wait [#allocation4], 16  }
 0x37e   :  { %927 = vsyncadd [#allocation4], 4294967280 }
 0x37f   :  { %928 = dma.done.wait [#allocation12], 32  }
 0x380   :  { %929 = vsyncadd [#allocation12], 4294967264 }
 0x381   :  { %930 = dma.done.wait [#allocation15], 16  }
 0x382   :  { %931 = vsyncadd [#allocation15], 4294967280 }
 0x383   :  { %643 = vsyncpa [#allocation3], 1 }
 0x384   :  { %644 = vsyncpa [#allocation6], 1 }
 0x385   :  { %645 = vsyncpa [#allocation9], 1 }
 0x386   :  { %646 = vsyncpa [#allocation4], 1 }
 0x387   :  { %647 = vsyncpa [#allocation12], 1 }
 0x388   :  { %648 = vsyncpa [#allocation15], 1 }

</bundles_post_ra>
